<compile_context>
chip_gen: v6e
topology: v6e:2x2x1
jax: 0.10.0
libtpu: 0.0.40
codegen_flags: <defaults>
</compile_context>

<pallas_src>
import math

import jax
import jax.numpy as jnp
from jax.experimental import pallas as pl
from jax.experimental.pallas import tpu as pltpu

# ---- model hyper-parameters (small, forward-consistent shapes) ----
BATCH = 2
SEQ = 8
D_MODEL = 32
N_HEADS = 4
D_K = D_MODEL // N_HEADS
D_FF = 64
THETA = 10000.0
EPS = 1e-5
BS = BATCH * SEQ          # fused batch*seq rows = 16
D_PAD = 128               # lane-dense padded width
NEG = -1e30               # finite "-inf" for the additive causal mask

# bf16 weight-slab row offsets (all multiples of 16 -> bf16 sublane-tile aligned)
W_QKV = 0                 # (128,128) fused (Wq*scale | Wk | Wv)^T, input rows zero-padded
W_ROT = 128               # (128,128) block-diag pair-rotation over the q|k lanes
W_O = 256                 # ( 32,128) Wo^T, output lanes zero-padded
W_13 = 288                # (128,128) (W1 | W3)^T, input rows zero-padded
W_2 = 416                 # ( 64,128) W2^T, output lanes zero-padded
W_ROWS = 480

# f32 const-slab row offsets (all multiples of 8)
F_G = 0                   # row 0: g1, row 1: g2 (lanes 0:D_MODEL)
F_COS = 8                 # (BS,128) cos table on q|k lanes, 1.0 elsewhere
F_SIN = 24                # (BS,128) sin table on q|k lanes, 0.0 elsewhere
F_BIAS = 40               # (4*BS,128) head-stacked block-causal additive mask (lanes 0:BS)
F_ROWS = 104


# --------------------------------------------------------------------------- kernel
def transformer_block_kernel(x_ref, f_ref, w_ref, out_ref):
    x = x_ref[...]                                        # (BS,128) f32, lanes>=D_MODEL are 0
    g1 = f_ref[F_G:F_G + 1, :]                            # (1,128)
    g2 = f_ref[F_G + 1:F_G + 2, :]
    cos = f_ref[F_COS:F_COS + BS, :]                      # (BS,128)
    sin = f_ref[F_SIN:F_SIN + BS, :]
    bias = f_ref[F_BIAS:F_BIAS + N_HEADS * BS, 0:BS]      # (4*BS,BS) head-stacked causal mask

    def rmsnorm(v, g):
        # padded lanes of v are exactly zero -> sum/D_MODEL == mean over the real lanes
        ms = jnp.sum(v * v, axis=-1, keepdims=True) * (1.0 / D_MODEL)
        return v * jax.lax.rsqrt(ms + EPS) * g

    # ---- ln1 + fused QKV projection (one MXU pass) ----
    h = rmsnorm(x, g1)
    qkv = jnp.dot(h.astype(jnp.bfloat16), w_ref[W_QKV:W_QKV + D_PAD, :],
                  preferred_element_type=jnp.float32)     # (BS,128) = q | k | v | 0

    # ---- RoPE on the whole q|k slab (one MXU pass; v and pad lanes pass through) ----
    qkv_rot = jnp.dot(qkv.astype(jnp.bfloat16), w_ref[W_ROT:W_ROT + D_PAD, :],
                      preferred_element_type=jnp.float32)
    qkv = qkv * cos + qkv_rot * sin
    qkvb = qkv.astype(jnp.bfloat16)

    # ---- per-head scores (4 small MXU passes), softmax batched across heads ----
    scores = []
    for hd in range(N_HEADS):
        qh = qkvb[:, hd * D_K:(hd + 1) * D_K]
        kh = qkvb[:, D_MODEL + hd * D_K:D_MODEL + (hd + 1) * D_K]
        scores.append(jax.lax.dot_general(qh, kh, (((1,), (1,)), ((), ())),
                                          preferred_element_type=jnp.float32))
    s = jnp.concatenate(scores, axis=0) + bias            # (4*BS, BS), sublane-stacked heads
    s = s - jnp.max(s, axis=-1, keepdims=True)
    p = jnp.exp(s)
    p = p * pl.reciprocal(jnp.sum(p, axis=-1, keepdims=True), approx=True)
    pb = p.astype(jnp.bfloat16)

    # ---- per-head P@V (4 small MXU passes), heads re-concatenated along lanes ----
    head_outs = []
    for hd in range(N_HEADS):
        ph = pb[hd * BS:(hd + 1) * BS, :]
        vh = qkvb[:, 2 * D_MODEL + hd * D_K:2 * D_MODEL + (hd + 1) * D_K]
        head_outs.append(jnp.dot(ph, vh, preferred_element_type=jnp.float32))
    attn = jnp.concatenate(head_outs, axis=-1)            # (BS, D_MODEL), stays in vregs

    # ---- output projection + residual (lane-dense: Wo output cols zero-padded to 128) ----
    attn_out = jnp.dot(attn.astype(jnp.bfloat16), w_ref[W_O:W_O + D_MODEL, :],
                       preferred_element_type=jnp.float32)      # (BS,128)
    res1 = x + attn_out

    # ---- ln2 + fused SwiGLU (W1|W3 one pass, exactly lane-dense) + residual ----
    h2 = rmsnorm(res1, g2)
    ab = jnp.dot(h2.astype(jnp.bfloat16), w_ref[W_13:W_13 + D_PAD, :],
                 preferred_element_type=jnp.float32)            # (BS,128) = a | b
    a = ab[:, :D_FF]
    b = ab[:, D_FF:]
    gated = (a * jax.lax.logistic(a)) * b                       # SiLU(a) * b, f32
    ffn = jnp.dot(gated.astype(jnp.bfloat16), w_ref[W_2:W_2 + D_FF, :],
                  preferred_element_type=jnp.float32)           # (BS,128)

    out_ref[...] = res1 + ffn                                   # lane-dense (unmasked) store


# --------------------------------------------------------------------------- host-side prep
def _rope_cos_sin():
    pos = jnp.arange(SEQ, dtype=jnp.float32)[:, None]                        # (S,1)
    inv_freq = THETA ** (-jnp.arange(0, D_K, 2, dtype=jnp.float32) / D_K)    # (D_K/2,)
    ang = pos * inv_freq[None, :]                                            # (S, D_K/2)
    cos = jnp.repeat(jnp.cos(ang), 2, axis=-1)                               # (S, D_K) paired
    sin = jnp.repeat(jnp.sin(ang), 2, axis=-1)
    cos_qk = jnp.tile(cos, (BATCH, 2 * N_HEADS))                             # (BS, 64) q|k
    sin_qk = jnp.tile(sin, (BATCH, 2 * N_HEADS))
    pad = D_PAD - 2 * D_MODEL
    cosA = jnp.concatenate([cos_qk, jnp.ones((BS, pad), jnp.float32)], axis=-1)
    sinA = jnp.concatenate([sin_qk, jnp.zeros((BS, pad), jnp.float32)], axis=-1)
    return cosA, sinA


def _rot_matrix():
    # (x @ R)[2i] = -x[2i+1], (x @ R)[2i+1] = x[2i] on the q|k lanes; zero elsewhere.
    R = jnp.zeros((D_PAD, D_PAD), jnp.float32)
    idx = jnp.arange(0, 2 * D_MODEL, 2)
    R = R.at[idx + 1, idx].set(-1.0)
    R = R.at[idx, idx + 1].set(1.0)
    return R


def _mask_bias():
    # Block-causal over fused (BATCH*SEQ) rows: causal within a batch, no cross-batch attn.
    r = jnp.arange(BS)
    allowed = (r[None, :] <= r[:, None]) & ((r[:, None] // SEQ) == (r[None, :] // SEQ))
    bias = jnp.where(allowed, 0.0, NEG).astype(jnp.float32)                  # (BS, BS)
    bias = jnp.tile(bias, (N_HEADS, 1))                                      # (4*BS, BS)
    return jnp.pad(bias, ((0, 0), (0, D_PAD - BS)))                          # (4*BS, 128)


def build_const_slab(params):
    g = jnp.zeros((8, D_PAD), jnp.float32)
    g = g.at[0, :D_MODEL].set(params["g1"])
    g = g.at[1, :D_MODEL].set(params["g2"])
    cosA, sinA = _rope_cos_sin()
    slab = jnp.concatenate([g, cosA, sinA, _mask_bias()], axis=0)            # (104, 128)
    assert slab.shape == (F_ROWS, D_PAD)
    return slab


def build_weight_slab(params):
    scale = 1.0 / math.sqrt(D_K)
    wqkv = jnp.concatenate([(params["wq"] * scale).T, params["wk"].T, params["wv"].T], axis=1)
    wqkv = jnp.pad(wqkv, ((0, D_PAD - D_MODEL), (0, D_PAD - 3 * D_MODEL)))   # (128,128)
    wo = jnp.pad(params["wo"].T, ((0, 0), (0, D_PAD - D_MODEL)))             # ( 32,128)
    w13 = jnp.pad(jnp.concatenate([params["w1"].T, params["w3"].T], axis=1),
                  ((0, D_PAD - D_MODEL), (0, 0)))                            # (128,128)
    w2 = jnp.pad(params["w2"].T, ((0, 0), (0, D_PAD - D_MODEL)))             # ( 64,128)
    slab = jnp.concatenate([wqkv, _rot_matrix(), wo, w13, w2], axis=0)       # (480,128)
    assert slab.shape == (W_ROWS, D_PAD)
    return slab.astype(jnp.bfloat16)


def transformer_block(x, params):
    x2 = jnp.pad(x.reshape(BS, D_MODEL), ((0, 0), (0, D_PAD - D_MODEL)))     # (16,128)
    fslab = build_const_slab(params)
    wslab = build_weight_slab(params)
    out = pl.pallas_call(
        transformer_block_kernel,
        out_shape=jax.ShapeDtypeStruct((BS, D_PAD), jnp.float32),
        in_specs=[pl.BlockSpec(memory_space=pltpu.MemorySpace.VMEM)] * 3,
        out_specs=pl.BlockSpec(memory_space=pltpu.MemorySpace.VMEM),
    )(x2, fslab, wslab)
    return out[:, :D_MODEL].reshape(BATCH, SEQ, D_MODEL)


# --------------------------------------------------------------------------- f32 reference
def reference_block(x, params):
    def rmsnorm(v, g):
        ms = jnp.mean(v * v, axis=-1, keepdims=True)
        return v * jax.lax.rsqrt(ms + EPS) * g

    def rope(v):  # (B,S,H,D_K), interleaved-pair convention
        pos = jnp.arange(SEQ, dtype=jnp.float32)[:, None]
        inv_freq = THETA ** (-jnp.arange(0, D_K, 2, dtype=jnp.float32) / D_K)
        ang = pos * inv_freq[None, :]
        c = jnp.cos(ang)[None, :, None, :]
        s = jnp.sin(ang)[None, :, None, :]
        v0, v1 = v[..., 0::2], v[..., 1::2]
        return jnp.stack([v0 * c - v1 * s, v0 * s + v1 * c], axis=-1).reshape(v.shape)

    h = rmsnorm(x, params["g1"])
    q = (h @ params["wq"].T).reshape(BATCH, SEQ, N_HEADS, D_K)
    k = (h @ params["wk"].T).reshape(BATCH, SEQ, N_HEADS, D_K)
    v = (h @ params["wv"].T).reshape(BATCH, SEQ, N_HEADS, D_K)
    q, k = rope(q), rope(k)
    scores = jnp.einsum("bqhd,bkhd->bhqk", q, k) / math.sqrt(D_K)
    causal = jnp.tril(jnp.ones((SEQ, SEQ), bool))
    scores = jnp.where(causal[None, None], scores, -jnp.inf)
    p = jax.nn.softmax(scores, axis=-1)
    attn = jnp.einsum("bhqk,bkhd->bqhd", p, v).reshape(BATCH, SEQ, D_MODEL)
    res1 = x + attn @ params["wo"].T
    h2 = rmsnorm(res1, params["g2"])
    a = h2 @ params["w1"].T
    b = h2 @ params["w3"].T
    return res1 + (a * jax.nn.sigmoid(a) * b) @ params["w2"].T


def init_params(key):
    ks = jax.random.split(key, 9)
    std = 0.02
    return {
        "g1": 1.0 + 0.1 * jax.random.normal(ks[0], (D_MODEL,), jnp.float32),
        "g2": 1.0 + 0.1 * jax.random.normal(ks[1], (D_MODEL,), jnp.float32),
        "wq": std * jax.random.normal(ks[2], (D_MODEL, D_MODEL), jnp.float32),
        "wk": std * jax.random.normal(ks[3], (D_MODEL, D_MODEL), jnp.float32),
        "wv": std * jax.random.normal(ks[4], (D_MODEL, D_MODEL), jnp.float32),
        "wo": std * jax.random.normal(ks[5], (D_MODEL, D_MODEL), jnp.float32),
        "w1": std * jax.random.normal(ks[6], (D_FF, D_MODEL), jnp.float32),
        "w2": std * jax.random.normal(ks[7], (D_MODEL, D_FF), jnp.float32),
        "w3": std * jax.random.normal(ks[8], (D_FF, D_MODEL), jnp.float32),
    }


if __name__ == "__main__":
    key = jax.random.PRNGKey(0)
    k_x, k_p = jax.random.split(key)
    x = jax.random.normal(k_x, (BATCH, SEQ, D_MODEL), jnp.float32)
    params = init_params(k_p)

    out = jax.block_until_ready(jax.jit(transformer_block)(x, params))
    ref = reference_block(x, params)

    assert out.shape == (BATCH, SEQ, D_MODEL)
    assert bool(jnp.all(jnp.isfinite(out)))
    # bf16 matmuls + approx reciprocal -> tolerance-level agreement with the f32 reference
    assert bool(jnp.allclose(out, ref, rtol=5e-2, atol=5e-2)), \
        float(jnp.max(jnp.abs(out - ref)))
    print("KERNEL_OK")
</pallas_src>

<mosaic_0001>
module attributes {stable_mosaic.version = 11 : i64} {
  func.func @transformer_block_kernel(%arg0: memref<16x128xf32, #tpu.memory_space<vmem>>, %arg1: memref<104x128xf32, #tpu.memory_space<vmem>>, %arg2: memref<480x128xbf16, #tpu.memory_space<vmem>>, %arg3: memref<16x128xf32, #tpu.memory_space<vmem>>) attributes {dimension_semantics = [], scalar_prefetch = 0 : i64, scratch_operands = 0 : i64, tpu.core_type = #tpu.core_type<tc>} {
    %c0 = arith.constant 0 : index
    %c0_0 = arith.constant 0 : index
    %0 = vector.load %arg0[%c0, %c0_0] : memref<16x128xf32, #tpu.memory_space<vmem>>, vector<16x128xf32>
    %c0_1 = arith.constant 0 : index
    %c0_2 = arith.constant 0 : index
    %1 = vector.load %arg1[%c0_1, %c0_2] : memref<104x128xf32, #tpu.memory_space<vmem>>, vector<1x128xf32>
    %c1 = arith.constant 1 : index
    %c0_3 = arith.constant 0 : index
    %2 = vector.load %arg1[%c1, %c0_3] : memref<104x128xf32, #tpu.memory_space<vmem>>, vector<1x128xf32>
    %c8 = arith.constant 8 : index
    %c0_4 = arith.constant 0 : index
    %3 = vector.load %arg1[%c8, %c0_4] : memref<104x128xf32, #tpu.memory_space<vmem>>, vector<16x128xf32>
    %c24 = arith.constant 24 : index
    %c0_5 = arith.constant 0 : index
    %4 = vector.load %arg1[%c24, %c0_5] : memref<104x128xf32, #tpu.memory_space<vmem>>, vector<16x128xf32>
    %c40 = arith.constant 40 : index
    %c0_6 = arith.constant 0 : index
    %5 = vector.load %arg1[%c40, %c0_6] : memref<104x128xf32, #tpu.memory_space<vmem>>, vector<64x16xf32>
    %6 = arith.mulf %0, %0 : vector<16x128xf32>
    %cst = arith.constant dense<0.000000e+00> : vector<16xf32>
    %7 = vector.multi_reduction <add>, %6, %cst [1] : vector<16x128xf32> to vector<16xf32>
    %8 = vector.shape_cast %7 : vector<16xf32> to vector<16x1xf32>
    %cst_7 = arith.constant 3.125000e-02 : f32
    %9 = vector.broadcast %cst_7 : f32 to vector<16x1xf32>
    %10 = arith.mulf %8, %9 : vector<16x1xf32>
    %cst_8 = arith.constant 9.99999974E-6 : f32
    %11 = vector.broadcast %cst_8 : f32 to vector<16x1xf32>
    %12 = arith.addf %10, %11 : vector<16x1xf32>
    %13 = math.rsqrt %12 : vector<16x1xf32>
    %14 = vector.broadcast %13 : vector<16x1xf32> to vector<16x128xf32>
    %15 = arith.mulf %0, %14 : vector<16x128xf32>
    %16 = vector.broadcast %1 : vector<1x128xf32> to vector<16x128xf32>
    %17 = arith.mulf %15, %16 : vector<16x128xf32>
    %18 = arith.truncf %17 : vector<16x128xf32> to vector<16x128xbf16>
    %c0_9 = arith.constant 0 : index
    %c0_10 = arith.constant 0 : index
    %19 = vector.load %arg2[%c0_9, %c0_10] : memref<480x128xbf16, #tpu.memory_space<vmem>>, vector<128x128xbf16>
    %cst_11 = arith.constant dense<0.000000e+00> : vector<16x128xf32>
    %20 = tpu.matmul %18, %19, %cst_11 {dimension_numbers = #tpu.dot_dimension_numbers<[1], [0], [0], [1], [0, 0, 1, 1], [], []>} : vector<16x128xbf16>, vector<128x128xbf16>, vector<16x128xf32> -> vector<16x128xf32>
    %21 = arith.truncf %20 : vector<16x128xf32> to vector<16x128xbf16>
    %c128 = arith.constant 128 : index
    %c0_12 = arith.constant 0 : index
    %22 = vector.load %arg2[%c128, %c0_12] : memref<480x128xbf16, #tpu.memory_space<vmem>>, vector<128x128xbf16>
    %cst_13 = arith.constant dense<0.000000e+00> : vector<16x128xf32>
    %23 = tpu.matmul %21, %22, %cst_13 {dimension_numbers = #tpu.dot_dimension_numbers<[1], [0], [0], [1], [0, 0, 1, 1], [], []>} : vector<16x128xbf16>, vector<128x128xbf16>, vector<16x128xf32> -> vector<16x128xf32>
    %24 = arith.mulf %20, %3 : vector<16x128xf32>
    %25 = arith.mulf %23, %4 : vector<16x128xf32>
    %26 = arith.addf %24, %25 : vector<16x128xf32>
    %27 = arith.truncf %26 : vector<16x128xf32> to vector<16x128xbf16>
    %28 = vector.extract_strided_slice %27 {offsets = [0, 0], sizes = [16, 8], strides = [1, 1]} : vector<16x128xbf16> to vector<16x8xbf16>
    %29 = vector.extract_strided_slice %27 {offsets = [0, 32], sizes = [16, 8], strides = [1, 1]} : vector<16x128xbf16> to vector<16x8xbf16>
    %cst_14 = arith.constant dense<0.000000e+00> : vector<16x16xf32>
    %30 = tpu.matmul %28, %29, %cst_14 {dimension_numbers = #tpu.dot_dimension_numbers<[1], [1], [0], [0], [0, 0, 1, 0], [], []>} : vector<16x8xbf16>, vector<16x8xbf16>, vector<16x16xf32> -> vector<16x16xf32>
    %31 = vector.extract_strided_slice %27 {offsets = [0, 8], sizes = [16, 8], strides = [1, 1]} : vector<16x128xbf16> to vector<16x8xbf16>
    %32 = vector.extract_strided_slice %27 {offsets = [0, 40], sizes = [16, 8], strides = [1, 1]} : vector<16x128xbf16> to vector<16x8xbf16>
    %cst_15 = arith.constant dense<0.000000e+00> : vector<16x16xf32>
    %33 = tpu.matmul %31, %32, %cst_15 {dimension_numbers = #tpu.dot_dimension_numbers<[1], [1], [0], [0], [0, 0, 1, 0], [], []>} : vector<16x8xbf16>, vector<16x8xbf16>, vector<16x16xf32> -> vector<16x16xf32>
    %34 = vector.extract_strided_slice %27 {offsets = [0, 16], sizes = [16, 8], strides = [1, 1]} : vector<16x128xbf16> to vector<16x8xbf16>
    %35 = vector.extract_strided_slice %27 {offsets = [0, 48], sizes = [16, 8], strides = [1, 1]} : vector<16x128xbf16> to vector<16x8xbf16>
    %cst_16 = arith.constant dense<0.000000e+00> : vector<16x16xf32>
    %36 = tpu.matmul %34, %35, %cst_16 {dimension_numbers = #tpu.dot_dimension_numbers<[1], [1], [0], [0], [0, 0, 1, 0], [], []>} : vector<16x8xbf16>, vector<16x8xbf16>, vector<16x16xf32> -> vector<16x16xf32>
    %37 = vector.extract_strided_slice %27 {offsets = [0, 24], sizes = [16, 8], strides = [1, 1]} : vector<16x128xbf16> to vector<16x8xbf16>
    %38 = vector.extract_strided_slice %27 {offsets = [0, 56], sizes = [16, 8], strides = [1, 1]} : vector<16x128xbf16> to vector<16x8xbf16>
    %cst_17 = arith.constant dense<0.000000e+00> : vector<16x16xf32>
    %39 = tpu.matmul %37, %38, %cst_17 {dimension_numbers = #tpu.dot_dimension_numbers<[1], [1], [0], [0], [0, 0, 1, 0], [], []>} : vector<16x8xbf16>, vector<16x8xbf16>, vector<16x16xf32> -> vector<16x16xf32>
    %40 = tpu.concatenate %30, %33, %36, %39 in 0 : vector<16x16xf32>, vector<16x16xf32>, vector<16x16xf32>, vector<16x16xf32> -> vector<64x16xf32>
    %41 = arith.addf %40, %5 : vector<64x16xf32>
    %cst_18 = arith.constant dense<0xFF800000> : vector<64xf32>
    %42 = vector.multi_reduction <maximumf>, %41, %cst_18 [1] : vector<64x16xf32> to vector<64xf32>
    %43 = vector.shape_cast %42 : vector<64xf32> to vector<64x1xf32>
    %44 = vector.broadcast %43 : vector<64x1xf32> to vector<64x16xf32>
    %45 = arith.subf %41, %44 : vector<64x16xf32>
    %46 = math.exp %45 : vector<64x16xf32>
    %cst_19 = arith.constant dense<0.000000e+00> : vector<64xf32>
    %47 = vector.multi_reduction <add>, %46, %cst_19 [1] : vector<64x16xf32> to vector<64xf32>
    %48 = vector.shape_cast %47 : vector<64xf32> to vector<64x1xf32>
    %49 = tpu.reciprocal %48 {approx = true} : vector<64x1xf32> -> vector<64x1xf32>
    %50 = vector.broadcast %49 : vector<64x1xf32> to vector<64x16xf32>
    %51 = arith.mulf %46, %50 : vector<64x16xf32>
    %52 = arith.truncf %51 : vector<64x16xf32> to vector<64x16xbf16>
    %53 = vector.extract_strided_slice %52 {offsets = [0, 0], sizes = [16, 16], strides = [1, 1]} : vector<64x16xbf16> to vector<16x16xbf16>
    %54 = vector.extract_strided_slice %27 {offsets = [0, 64], sizes = [16, 8], strides = [1, 1]} : vector<16x128xbf16> to vector<16x8xbf16>
    %cst_20 = arith.constant dense<0.000000e+00> : vector<16x8xf32>
    %55 = tpu.matmul %53, %54, %cst_20 {dimension_numbers = #tpu.dot_dimension_numbers<[1], [0], [0], [1], [0, 0, 1, 1], [], []>} : vector<16x16xbf16>, vector<16x8xbf16>, vector<16x8xf32> -> vector<16x8xf32>
    %56 = vector.extract_strided_slice %52 {offsets = [16, 0], sizes = [16, 16], strides = [1, 1]} : vector<64x16xbf16> to vector<16x16xbf16>
    %57 = vector.extract_strided_slice %27 {offsets = [0, 72], sizes = [16, 8], strides = [1, 1]} : vector<16x128xbf16> to vector<16x8xbf16>
    %cst_21 = arith.constant dense<0.000000e+00> : vector<16x8xf32>
    %58 = tpu.matmul %56, %57, %cst_21 {dimension_numbers = #tpu.dot_dimension_numbers<[1], [0], [0], [1], [0, 0, 1, 1], [], []>} : vector<16x16xbf16>, vector<16x8xbf16>, vector<16x8xf32> -> vector<16x8xf32>
    %59 = vector.extract_strided_slice %52 {offsets = [32, 0], sizes = [16, 16], strides = [1, 1]} : vector<64x16xbf16> to vector<16x16xbf16>
    %60 = vector.extract_strided_slice %27 {offsets = [0, 80], sizes = [16, 8], strides = [1, 1]} : vector<16x128xbf16> to vector<16x8xbf16>
    %cst_22 = arith.constant dense<0.000000e+00> : vector<16x8xf32>
    %61 = tpu.matmul %59, %60, %cst_22 {dimension_numbers = #tpu.dot_dimension_numbers<[1], [0], [0], [1], [0, 0, 1, 1], [], []>} : vector<16x16xbf16>, vector<16x8xbf16>, vector<16x8xf32> -> vector<16x8xf32>
    %62 = vector.extract_strided_slice %52 {offsets = [48, 0], sizes = [16, 16], strides = [1, 1]} : vector<64x16xbf16> to vector<16x16xbf16>
    %63 = vector.extract_strided_slice %27 {offsets = [0, 88], sizes = [16, 8], strides = [1, 1]} : vector<16x128xbf16> to vector<16x8xbf16>
    %cst_23 = arith.constant dense<0.000000e+00> : vector<16x8xf32>
    %64 = tpu.matmul %62, %63, %cst_23 {dimension_numbers = #tpu.dot_dimension_numbers<[1], [0], [0], [1], [0, 0, 1, 1], [], []>} : vector<16x16xbf16>, vector<16x8xbf16>, vector<16x8xf32> -> vector<16x8xf32>
    %65 = tpu.concatenate %55, %58, %61, %64 in 1 : vector<16x8xf32>, vector<16x8xf32>, vector<16x8xf32>, vector<16x8xf32> -> vector<16x32xf32>
    %66 = arith.truncf %65 : vector<16x32xf32> to vector<16x32xbf16>
    %c256 = arith.constant 256 : index
    %c0_24 = arith.constant 0 : index
    %67 = vector.load %arg2[%c256, %c0_24] : memref<480x128xbf16, #tpu.memory_space<vmem>>, vector<32x128xbf16>
    %cst_25 = arith.constant dense<0.000000e+00> : vector<16x128xf32>
    %68 = tpu.matmul %66, %67, %cst_25 {dimension_numbers = #tpu.dot_dimension_numbers<[1], [0], [0], [1], [0, 0, 1, 1], [], []>} : vector<16x32xbf16>, vector<32x128xbf16>, vector<16x128xf32> -> vector<16x128xf32>
    %69 = arith.addf %0, %68 : vector<16x128xf32>
    %70 = arith.mulf %69, %69 : vector<16x128xf32>
    %cst_26 = arith.constant dense<0.000000e+00> : vector<16xf32>
    %71 = vector.multi_reduction <add>, %70, %cst_26 [1] : vector<16x128xf32> to vector<16xf32>
    %72 = vector.shape_cast %71 : vector<16xf32> to vector<16x1xf32>
    %cst_27 = arith.constant 3.125000e-02 : f32
    %73 = vector.broadcast %cst_27 : f32 to vector<16x1xf32>
    %74 = arith.mulf %72, %73 : vector<16x1xf32>
    %cst_28 = arith.constant 9.99999974E-6 : f32
    %75 = vector.broadcast %cst_28 : f32 to vector<16x1xf32>
    %76 = arith.addf %74, %75 : vector<16x1xf32>
    %77 = math.rsqrt %76 : vector<16x1xf32>
    %78 = vector.broadcast %77 : vector<16x1xf32> to vector<16x128xf32>
    %79 = arith.mulf %69, %78 : vector<16x128xf32>
    %80 = vector.broadcast %2 : vector<1x128xf32> to vector<16x128xf32>
    %81 = arith.mulf %79, %80 : vector<16x128xf32>
    %82 = arith.truncf %81 : vector<16x128xf32> to vector<16x128xbf16>
    %c288 = arith.constant 288 : index
    %c0_29 = arith.constant 0 : index
    %83 = vector.load %arg2[%c288, %c0_29] : memref<480x128xbf16, #tpu.memory_space<vmem>>, vector<128x128xbf16>
    %cst_30 = arith.constant dense<0.000000e+00> : vector<16x128xf32>
    %84 = tpu.matmul %82, %83, %cst_30 {dimension_numbers = #tpu.dot_dimension_numbers<[1], [0], [0], [1], [0, 0, 1, 1], [], []>} : vector<16x128xbf16>, vector<128x128xbf16>, vector<16x128xf32> -> vector<16x128xf32>
    %85 = vector.extract_strided_slice %84 {offsets = [0, 0], sizes = [16, 64], strides = [1, 1]} : vector<16x128xf32> to vector<16x64xf32>
    %86 = vector.extract_strided_slice %84 {offsets = [0, 64], sizes = [16, 64], strides = [1, 1]} : vector<16x128xf32> to vector<16x64xf32>
    %87 = arith.negf %85 : vector<16x64xf32>
    %88 = math.exp %87 : vector<16x64xf32>
    %cst_31 = arith.constant 1.000000e+00 : f32
    %89 = vector.broadcast %cst_31 : f32 to vector<16x64xf32>
    %90 = arith.addf %89, %88 : vector<16x64xf32>
    %91 = arith.divf %89, %90 : vector<16x64xf32>
    %92 = arith.mulf %85, %91 : vector<16x64xf32>
    %93 = arith.mulf %92, %86 : vector<16x64xf32>
    %94 = arith.truncf %93 : vector<16x64xf32> to vector<16x64xbf16>
    %c416 = arith.constant 416 : index
    %c0_32 = arith.constant 0 : index
    %95 = vector.load %arg2[%c416, %c0_32] : memref<480x128xbf16, #tpu.memory_space<vmem>>, vector<64x128xbf16>
    %cst_33 = arith.constant dense<0.000000e+00> : vector<16x128xf32>
    %96 = tpu.matmul %94, %95, %cst_33 {dimension_numbers = #tpu.dot_dimension_numbers<[1], [0], [0], [1], [0, 0, 1, 1], [], []>} : vector<16x64xbf16>, vector<64x128xbf16>, vector<16x128xf32> -> vector<16x128xf32>
    %97 = arith.addf %69, %96 : vector<16x128xf32>
    %c0_34 = arith.constant 0 : index
    %c0_35 = arith.constant 0 : index
    %98 = vector.load %arg3[%c0_34, %c0_35] : memref<16x128xf32, #tpu.memory_space<vmem>>, vector<16x128xf32>
    tpu.vector_store %arg3[%c0_34, %c0_35], %97 {strides = array<i32>} : memref<16x128xf32, #tpu.memory_space<vmem>>, vector<16x128xf32>,
    return
  }
}

</mosaic_0001>

<bundles_post_ra>
// kernel: tile.15
= control target key start
LH: loop header
LB: loop body
LE: loop exit
PB: predicated region body
PF: predicated region fallthrough
CT: control target
= control target key end

     0   :  { %s154_s0 = inlined_call_operand.vmem [shape: f32[8,8], index: 0, kind: input, shape index: {}]   ;;  %s155_s1 = inlined_call_operand.vmem [shape: f32[2,8,8,8], index: 1, kind: output, shape index: {}]  }
   0x1   :  { %v4_v0 = vld [vmem:[%s154_s0] ss:$0 sm:$0xff]  ;;  %v51_v1 = vld [vmem:[%s154_s0 + $0x1] ss:$0 sm:$0xff]  ;;  %v54_v2 = vld [vmem:[%s154_s0 + $0x2] ss:$0 sm:$0xff] }
   0x2   :  { %5 = vst [vmem:[%s155_s1] sm:$0xff] %v4_v0  ;;  %50 = vst [vmem:[%s155_s1 + $0x40] sm:$0xff] %v4_v0  ;;  %v57_v3 = vld [vmem:[%s154_s0 + $0x3] ss:$0 sm:$0xff]  ;;  %v60_v4 = vld [vmem:[%s154_s0 + $0x4] ss:$0 sm:$0xff] }
   0x3   :  { %52 = vst [vmem:[%s155_s1 + $0x8] sm:$0xff] %v51_v1  ;;  %53 = vst [vmem:[%s155_s1 + $0x48] sm:$0xff] %v51_v1  ;;  %v63_v5 = vld [vmem:[%s154_s0 + $0x5] ss:$0 sm:$0xff]  ;;  %v66_v6 = vld [vmem:[%s154_s0 + $0x6] ss:$0 sm:$0xff] }
   0x4   :  { %55 = vst [vmem:[%s155_s1 + $0x10] sm:$0xff] %v54_v2  ;;  %56 = vst [vmem:[%s155_s1 + $0x50] sm:$0xff] %v54_v2  ;;  %v69_v7 = vld [vmem:[%s154_s0 + $0x7] ss:$0 sm:$0xff] }
   0x5   :  { %58 = vst [vmem:[%s155_s1 + $0x18] sm:$0xff] %v57_v3  ;;  %59 = vst [vmem:[%s155_s1 + $0x58] sm:$0xff] %v57_v3 }
   0x6   :  { %61 = vst [vmem:[%s155_s1 + $0x20] sm:$0xff] %v60_v4  ;;  %62 = vst [vmem:[%s155_s1 + $0x60] sm:$0xff] %v60_v4 }
   0x7   :  { %64 = vst [vmem:[%s155_s1 + $0x28] sm:$0xff] %v63_v5  ;;  %65 = vst [vmem:[%s155_s1 + $0x68] sm:$0xff] %v63_v5 }
   0x8   :  { %67 = vst [vmem:[%s155_s1 + $0x30] sm:$0xff] %v66_v6  ;;  %68 = vst [vmem:[%s155_s1 + $0x70] sm:$0xff] %v66_v6 }
   0x9   :  { %70 = vst [vmem:[%s155_s1 + $0x38] sm:$0xff] %v69_v7  ;;  %71 = vst [vmem:[%s155_s1 + $0x78] sm:$0xff] %v69_v7 }

// kernel: tile.16
= control target key start
LH: loop header
LB: loop body
LE: loop exit
PB: predicated region body
PF: predicated region fallthrough
CT: control target
= control target key end

     0   :  { %vm4_vm0 = vcmask 1047556   ;;  %s209_s14 = smov 48   ;;  %s210_s19 = smov 56   ;;  %vm6_vm1 = vcmask 64512   ;;  %vm25_vm2 = vcmask 523712   ;;  %vm46_vm3 = vcmask 458112   ;;  %s388_s0 = inlined_call_operand.vmem [shape: f32[2,8,8,8], index: 0, kind: input, shape index: {}]   ;;  %s389_s1 = inlined_call_operand.vmem [shape: f32[16,64], index: 1, kind: output, shape index: {}]  }
   0x1   :  { %v172_v0 = vld [vmem:[%s388_s0 + $0x6] ss:$8 sm:$0xf]   ;;  %v167_v3 = vld [vmem:[%s388_s0 + $0x7] ss:$8 sm:$0xf]  }
   0x2   :  { %v173_v1 = vld [vmem:[%s388_s0 + $0x6] ss:$8 sm:$0xf0]   ;;  %v168_v4 = vld [vmem:[%s388_s0 + $0x7] ss:$8 sm:$0xf0]  }
   0x3   :  { %v43_v2 = vsel %vm4_vm0, %v173_v1, %v172_v0  ;;  %v22_v5 = vsel %vm4_vm0, %v168_v4, %v167_v3  ;;  %v174_v6 = vld [vmem:[%s388_s0 + $0x46] ss:$8 sm:$0xf]   ;;  %v169_v9 = vld [vmem:[%s388_s0 + $0x47] ss:$8 sm:$0xf]  }
   0x4   :  { %44 = vrot.lane.b32.xlu1 %v43_v2, %s209_s14  ;;  %v175_v7 = vld [vmem:[%s388_s0 + $0x46] ss:$8 sm:$0xf0]   ;;  %23 = vrot.lane.b32.xlu0 %v22_v5, %s210_s19  ;;  %v170_v10 = vld [vmem:[%s388_s0 + $0x47] ss:$8 sm:$0xf0]  }
   0x5   :  { %v53_v8 = vsel %vm4_vm0, %v175_v7, %v174_v6  ;;  %v32_v11 = vsel %vm4_vm0, %v170_v10, %v169_v9  ;;  %v179_v12 = vld [vmem:[%s388_s0 + $0x45] ss:$8 sm:$0xf]   ;;  %v184_v18 = vld [vmem:[%s388_s0 + $0x44] ss:$8 sm:$0xf]  }
   0x6   :  { %v180_v13 = vld [vmem:[%s388_s0 + $0x45] ss:$8 sm:$0xf0]   ;;  %v185_v19 = vld [vmem:[%s388_s0 + $0x44] ss:$8 sm:$0xf0]  }
   0x7   :  { %v177_v14 = vld [vmem:[%s388_s0 + $0x5] ss:$8 sm:$0xf]   ;;  %v74_v16 = vsel %vm4_vm0, %v180_v13, %v179_v12  ;;  %v182_v20 = vld [vmem:[%s388_s0 + $0x4] ss:$8 sm:$0xf]   ;;  %v95_v22 = vsel %vm4_vm0, %v185_v19, %v184_v18 }
   0x8   :  { %54 = vrot.lane.b32.xlu1 %v53_v8, %s209_s14  ;;  %v178_v15 = vld [vmem:[%s388_s0 + $0x5] ss:$8 sm:$0xf0]   ;;  %33 = vrot.lane.b32.xlu0 %v32_v11, %s210_s19  ;;  %v183_v21 = vld [vmem:[%s388_s0 + $0x4] ss:$8 sm:$0xf0]  }
   0x9   :  { %v64_v17 = vsel %vm4_vm0, %v178_v15, %v177_v14  ;;  %s211_s11 = smov 40   ;;  %v85_v23 = vsel %vm4_vm0, %v183_v21, %v182_v20  ;;  %v189_v24 = vld [vmem:[%s388_s0 + $0x43] ss:$8 sm:$0xf]   ;;  %s212_s20 = smov 32   ;;  %vm67_vm4 = vcmask 392512  }
   0xa   :  { %v190_v25 = vld [vmem:[%s388_s0 + $0x43] ss:$8 sm:$0xf0]   ;;  %v194_v28 = vld [vmem:[%s388_s0 + $0x42] ss:$8 sm:$0xf]  }
   0xb   :  { %v187_v26 = vld [vmem:[%s388_s0 + $0x3] ss:$8 sm:$0xf]   ;;  %v195_v29 = vld [vmem:[%s388_s0 + $0x42] ss:$8 sm:$0xf0]   ;;  %v116_v30 = vsel %vm4_vm0, %v190_v25, %v189_v24 }
   0xc   :  { %75 = vrot.lane.b32.xlu1 %v74_v16, %s211_s11  ;;  %65 = vrot.lane.b32.xlu0 %v64_v17, %s211_s11  ;;  %v188_v27 = vld [vmem:[%s388_s0 + $0x3] ss:$8 sm:$0xf0]   ;;  %v192_v31 = vld [vmem:[%s388_s0 + $0x2] ss:$8 sm:$0xf]   ;;  %v137_v40 = vsel %vm4_vm0, %v195_v29, %v194_v28 }
   0xd   :  { %v2_v32 = vld [vmem:[%s388_s0] ss:$8 sm:$0xf]   ;;  %v106_v33 = vsel %vm4_vm0, %v188_v27, %v187_v26  ;;  %v193_v36 = vld [vmem:[%s388_s0 + $0x2] ss:$8 sm:$0xf0]  }
   0xe   :  { %v3_v34 = vld [vmem:[%s388_s0] ss:$8 sm:$0xf0]   ;;  %s213_s8 = smov 24   ;;  %v127_v41 = vsel %vm4_vm0, %v193_v36, %v192_v31  ;;  %s215_s21 = smov 8   ;;  %vm88_vm5 = vcmask 326912  }
   0xf   :  { %v164_v35 = vld [vmem:[%s388_s0 + $0x40] ss:$8 sm:$0xf]   ;;  %v5_v37 = vsel %vm4_vm0, %v3_v34, %v2_v32  ;;  %v199_v42 = vld [vmem:[%s388_s0 + $0x41] ss:$8 sm:$0xf]  }
  0x10   :  { %96 = vrot.lane.b32.xlu1 %v95_v22, %s212_s20  ;;  %86 = vrot.lane.b32.xlu0 %v85_v23, %s212_s20  ;;  %v165_v38 = vld [vmem:[%s388_s0 + $0x40] ss:$8 sm:$0xf0]   ;;  %7 = vst.msk [vmem:[%s389_s1] sm:$0xff] %vm6_vm1, %v5_v37   ;;  %vm109_vm6 = vcmask 261312   ;;  %vm130_vm7 = vcmask 195712  }
  0x11   :  { %v13_v39 = vsel %vm4_vm0, %v165_v38, %v164_v35  ;;  %v200_v43 = vld [vmem:[%s388_s0 + $0x41] ss:$8 sm:$0xf0]   ;;  %vm151_vm8 = vcmask 130112  }
  0x12   :  { %166 = vst.msk [vmem:[%s389_s1 + $0x8] sm:$0xff] %vm6_vm1, %v13_v39   ;;  %v197_v44 = vld [vmem:[%s388_s0 + $0x1] ss:$8 sm:$0xf]   ;;  %v158_v46 = vsel %vm4_vm0, %v200_v43, %v199_v42 }
  0x13   :  { %v198_v45 = vld [vmem:[%s388_s0 + $0x1] ss:$8 sm:$0xf0]   ;;  %s214_s0 = smov 16  }
  0x14   :  { %117 = vrot.lane.b32.xlu1 %v116_v30, %s213_s8  ;;  %107 = vrot.lane.b32.xlu0 %v106_v33, %s213_s8  ;;  %v148_v47 = vsel %vm4_vm0, %v198_v45, %v197_v44 }
  0x18   :  { %138 = vrot.lane.b32.xlu1 %v137_v40, %s214_s0  ;;  %128 = vrot.lane.b32.xlu0 %v127_v41, %s214_s0 }
  0x1c   :  { %159 = vrot.lane.b32.xlu1 %v158_v46, %s215_s21  ;;  %149 = vrot.lane.b32.xlu0 %v148_v47, %s215_s21 }
  0x76   :  { %v45_v48 = vpop.permute.xlu1 %44   ;;  %v24_v49 = vpop.permute.xlu0 %23  }
  0x77   :  { %26 = vst.msk [vmem:[%s389_s1] sm:$0xff] %vm25_vm2, %v24_v49  }
  0x78   :  { %47 = vst.msk [vmem:[%s389_s1] sm:$0xff] %vm46_vm3, %v45_v48  }
  0x7a   :  { %v55_v50 = vpop.permute.xlu1 %54   ;;  %v34_v51 = vpop.permute.xlu0 %33  }
  0x7b   :  { %171 = vst.msk [vmem:[%s389_s1 + $0x8] sm:$0xff] %vm25_vm2, %v34_v51  }
  0x7c   :  { %176 = vst.msk [vmem:[%s389_s1 + $0x8] sm:$0xff] %vm46_vm3, %v55_v50  }
  0x7e   :  { %v76_v52 = vpop.permute.xlu1 %75   ;;  %v66_v53 = vpop.permute.xlu0 %65  }
  0x7f   :  { %181 = vst.msk [vmem:[%s389_s1 + $0x8] sm:$0xff] %vm67_vm4, %v76_v52   ;;  %68 = vst.msk [vmem:[%s389_s1] sm:$0xff] %vm67_vm4, %v66_v53  }
  0x82   :  { %v97_v54 = vpop.permute.xlu1 %96   ;;  %v87_v55 = vpop.permute.xlu0 %86  }
  0x83   :  { %186 = vst.msk [vmem:[%s389_s1 + $0x8] sm:$0xff] %vm88_vm5, %v97_v54   ;;  %89 = vst.msk [vmem:[%s389_s1] sm:$0xff] %vm88_vm5, %v87_v55  }
  0x86   :  { %v118_v56 = vpop.permute.xlu1 %117   ;;  %v108_v57 = vpop.permute.xlu0 %107  }
  0x87   :  { %191 = vst.msk [vmem:[%s389_s1 + $0x8] sm:$0xff] %vm109_vm6, %v118_v56   ;;  %110 = vst.msk [vmem:[%s389_s1] sm:$0xff] %vm109_vm6, %v108_v57  }
  0x8a   :  { %v139_v58 = vpop.permute.xlu1 %138   ;;  %v129_v59 = vpop.permute.xlu0 %128  }
  0x8b   :  { %196 = vst.msk [vmem:[%s389_s1 + $0x8] sm:$0xff] %vm130_vm7, %v139_v58   ;;  %131 = vst.msk [vmem:[%s389_s1] sm:$0xff] %vm130_vm7, %v129_v59  }
  0x8e   :  { %v160_v60 = vpop.permute.xlu1 %159   ;;  %v150_v61 = vpop.permute.xlu0 %149  }
  0x8f   :  { %201 = vst.msk [vmem:[%s389_s1 + $0x8] sm:$0xff] %vm151_vm8, %v160_v60   ;;  %152 = vst.msk [vmem:[%s389_s1] sm:$0xff] %vm151_vm8, %v150_v61  }

// kernel: transformer_block.1
= control target key start
LH: loop header
LB: loop body
LE: loop exit
PB: predicated region body
PF: predicated region fallthrough
CT: control target
= control target key end

     0   :  { %v1426_v2 = vmov 0.0   ;;  %vm1427_vm0 = vmmov 0   ;;  %s1428_s29 = smov 80   ;;  %s1429_s30 = smov 96   ;;  %vm273_vm1 = vcmask 64512   ;;  %vm482_vm2 = vcmask 130048   ;;  %s1743_s0 = inlined_call_operand.vmem [shape: f32[16,128], index: 0, kind: input, shape index: {}]   ;;  %s1744_s2 = inlined_call_operand.vmem [shape: bf16[480,128], index: 2, kind: input, shape index: {}]   ;;  %s1745_s1 = inlined_call_operand.vmem [shape: f32[104,128], index: 1, kind: input, shape index: {}]   ;;  %s1746_s3 = inlined_call_operand.vmem [shape: f32[16,128], index: 3, kind: output, shape index: {}]  }
   0x1   :  { %v1465_v0 = vld [vmem:[%s1743_s0] sm:$0xff]  ;;  %v1470_v1 = vld [vmem:[%s1743_s0 + $0x8] sm:$0xff]  ;;  %1189 = vmatprep.subr.bf16.mxu0 %v1426_v2  ;;  %1209 = vmatprep.subr.bf16.mxu1 %v1426_v2  ;;  %v1348_v4 = vld [vmem:[%s1744_s2 + $0x38] sm:$0xff]   ;;  %s1430_s4 = smov 88   ;;  %s1431_s5 = smov 120   ;;  %vm791_vm3 = vcmask 195584  }
   0x2   :  { %v31_v3 = vmul.f32 %v1465_v0, %v1465_v0  ;;  %v32_v5 = vmul.f32 %v1470_v1, %v1470_v1  ;;  %1190 = vmatpush3.bf16.msra.mxu0 %v1348_v4  ;;  %v1349_v6 = vld [vmem:[%s1744_s2 + $0x30] sm:$0xff]   ;;  %v1350_v7 = vld [vmem:[%s1744_s2 + $0x28] sm:$0xff]   ;;  %v1351_v8 = vld [vmem:[%s1744_s2 + $0x20] sm:$0xff]   ;;  %1205 = vmatprep.mubr.msk.bf16.mxu0 %vm1427_vm0, %v1426_v2  ;;  %s1432_s6 = smov 72   ;;  %s1433_s7 = smov 112   ;;  %vm811_vm4 = vcmask 261120  }
   0x3   :  { %1191 = vmatprep.subr.bf16.mxu0 %v1426_v2  ;;  %v1352_v9 = vld [vmem:[%s1744_s2 + $0x18] sm:$0xff]   ;;  %1225 = vmatprep.mubr.msk.bf16.mxu1 %vm1427_vm0, %v1426_v2  ;;  %v1353_v10 = vld [vmem:[%s1744_s2 + $0x10] sm:$0xff]   ;;  %v1354_v11 = vld [vmem:[%s1744_s2 + $0x8] sm:$0xff]   ;;  %s1434_s8 = smov 104   ;;  %s1435_s24 = smov 64   ;;  %vm1041_vm5 = vcmask 523264  }
   0x4   :  { %33 = vadd.xlane.f32.xlu0 %v31_v3  ;;  %v1355_v12 = vld [vmem:[%s1744_s2] sm:$0xff]   ;;  %v1356_v13 = vld [vmem:[%s1744_s2 + $0x78] sm:$0xff]   ;;  %v1357_v14 = vld [vmem:[%s1744_s2 + $0x70] sm:$0xff]   ;;  %s1436_s25 = smov 48   ;;  %s1437_s26 = smov 40  }
   0x5   :  { %1210 = vmatpush3.bf16.msra.mxu1 %v1356_v13  ;;  %v1358_v15 = vld [vmem:[%s1744_s2 + $0x68] sm:$0xff]   ;;  %v1359_v16 = vld [vmem:[%s1744_s2 + $0x60] sm:$0xff]   ;;  %v1360_v17 = vld [vmem:[%s1744_s2 + $0x58] sm:$0xff]   ;;  %s1438_s27 = smov 56  }
   0x6   :  { %1192 = vmatpush3.bf16.msra.mxu0 %v1349_v6  ;;  %1211 = vmatprep.subr.bf16.mxu1 %v1426_v2  ;;  %v1361_v18 = vld [vmem:[%s1744_s2 + $0x50] sm:$0xff]   ;;  %v1094_v28 = vld [vmem:[%s1745_s1] ss:$0 sm:$0xff]  ;;  %v1362_v33 = vld [vmem:[%s1744_s2 + $0x48] sm:$0xff]  }
   0x7   :  { %1193 = vmatprep.subr.bf16.mxu0 %v1426_v2  ;;  %v1363_v34 = vld [vmem:[%s1744_s2 + $0x40] sm:$0xff]   ;;  %v21_v40 = vld [vmem:[%s1745_s1 + $0x18] sm:$0xff]  ;;  %v19_v42 = vld [vmem:[%s1745_s1 + $0x8] sm:$0xff] }
   0x8   :  { %35 = vadd.xlane.f32.xlu0 %v32_v5  ;;  %v20_v43 = vld [vmem:[%s1745_s1 + $0x10] sm:$0xff]  ;;  %v22_v45 = vld [vmem:[%s1745_s1 + $0x20] sm:$0xff]  ;;  %v23_v5 = vld [vmem:[%s1745_s1 + $0x28] sm:$0xff] }
   0x9   :  { %1212 = vmatpush3.bf16.msra.mxu1 %v1357_v14 }
   0xa   :  { %1194 = vmatpush3.bf16.msra.mxu0 %v1350_v7  ;;  %1213 = vmatprep.subr.bf16.mxu1 %v1426_v2 }
   0xb   :  { %1195 = vmatprep.subr.bf16.mxu0 %v1426_v2 }
   0xd   :  { %1214 = vmatpush3.bf16.msra.mxu1 %v1358_v15 }
   0xe   :  { %1196 = vmatpush3.bf16.msra.mxu0 %v1351_v8  ;;  %1215 = vmatprep.subr.bf16.mxu1 %v1426_v2 }
   0xf   :  { %1197 = vmatprep.subr.bf16.mxu0 %v1426_v2 }
  0x11   :  { %1216 = vmatpush3.bf16.msra.mxu1 %v1359_v16 }
  0x12   :  { %1198 = vmatpush3.bf16.msra.mxu0 %v1352_v9  ;;  %1217 = vmatprep.subr.bf16.mxu1 %v1426_v2  ;;  %v25_v9 = vld [vmem:[%s1745_s1 + $0x38] sm:$0xff] }
  0x13   :  { %1199 = vmatprep.subr.bf16.mxu0 %v1426_v2 }
  0x15   :  { %1218 = vmatpush3.bf16.msra.mxu1 %v1360_v17 }
  0x16   :  { %1200 = vmatpush3.bf16.msra.mxu0 %v1353_v10  ;;  %1219 = vmatprep.subr.bf16.mxu1 %v1426_v2  ;;  %v24_v10 = vld [vmem:[%s1745_s1 + $0x30] sm:$0xff] }
  0x17   :  { %1201 = vmatprep.subr.bf16.mxu0 %v1426_v2 }
  0x19   :  { %1220 = vmatpush3.bf16.msra.mxu1 %v1361_v18  ;;  %v26_v18 = vld [vmem:[%s1745_s1 + $0x40] sm:$0xff] }
  0x1a   :  { %1202 = vmatpush3.bf16.msra.mxu0 %v1354_v11  ;;  %1221 = vmatprep.subr.bf16.mxu1 %v1426_v2 }
  0x1b   :  { %1203 = vmatprep.subr.bf16.mxu0 %v1426_v2 }
  0x1d   :  { %1222 = vmatpush3.bf16.msra.mxu1 %v1362_v33 }
  0x1e   :  { %1204 = vmatpush3.bf16.msra.mxu0 %v1355_v12  ;;  %1223 = vmatprep.subr.bf16.mxu1 %v1426_v2 }
  0x1f   :  { %1229 = vmatprep.subr.bf16.mxu0 %v1426_v2 }
  0x21   :  { %1224 = vmatpush3.bf16.msra.mxu1 %v1363_v34 }
  0x22   :  { %1235 = vmatprep.subr.bf16.mxu1 %v1426_v2 }
  0x8d   :  { %v34_v19 = vpop.xlane.xlu0 %33 }
  0x8e   :  { %v37_v20 = vmul.f32 0.03125, %v34_v19  ;;  %v27_v19 = vld [vmem:[%s1745_s1 + $0x48] sm:$0xff] }
  0x90   :  { %v39_v21 = vadd.f32 1e-05, %v37_v20 }
  0x91   :  { %v36_v22 = vpop.xlane.xlu0 %35 }
  0x92   :  { %1378 = vrsqrt.f32 %v39_v21  ;;  %v38_v23 = vmul.f32 0.03125, %v36_v22 }
  0x94   :  { %v40_v24 = vadd.f32 1e-05, %v38_v23 }
  0x96   :  { %1380 = vrsqrt.f32 %v40_v24 }
  0x9f   :  { %v1379_v25 = vpop.eup %1378 }
  0xa0   :  { %v43_v26 = vmul.f32 %v1379_v25, %v1465_v0 }
  0xa2   :  { %v49_v30 = vmul.f32 %v1094_v28, %v43_v26 }
  0xa3   :  { %v1381_v27 = vpop.eup %1380 }
  0xa4   :  { %v44_v29 = vmul.f32 %v1381_v27, %v1470_v1 }
  0xa6   :  { %v50_v31 = vmul.f32 %v1094_v28, %v44_v29  ;;  %v29_v28 = vld [vmem:[%s1745_s1 + $0x58] sm:$0xff]  ;;  %v28_v29 = vld [vmem:[%s1745_s1 + $0x50] sm:$0xff] }
  0xa8   :  { %v51_v32 = vpack.c.bf16 %v50_v31, %v49_v30 }
  0xaa   :  { %1206 = vmatmul.mubr.bf16.vlgmr.msra.gmra.mxu0 %v51_v32 }
  0xab   :  { %1231 = vmatprep.mubr.msk.bf16.mxu0 %vm1427_vm0, %v1426_v2 }
 0x16a   :  { %v150_v35 = vpop.f32.mrf.mxu0 }
 0x16b   :  { %v263_v48 = vmul.f32 %v150_v35, %v19_v42 }
 0x16c   :  { %v1207_v36 = vpop.f32.mrf.mxu0 }
 0x16e   :  { %v153_v37 = vpop.f32.mrf.mxu0 }
 0x16f   :  { %v157_v38 = vpack.c.bf16 %v153_v37, %v150_v35  ;;  %v264_v49 = vmul.f32 %v153_v37, %v20_v43 }
 0x170   :  { %v1208_v39 = vpop.f32.mrf.mxu0 }
 0x171   :  { %1226 = vmatmul.mubr.bf16.vlgmr.msra.gmra.mxu1 %v157_v38  ;;  %v30_v38 = vld [vmem:[%s1745_s1 + $0x60] sm:$0xff] }
 0x172   :  { %1237 = vmatprep.mubr.msk.bf16.mxu1 %vm1427_vm0, %v1426_v2 }
 0x231   :  { %v256_v41 = vpop.f32.mrf.mxu1 }
 0x232   :  { %v265_v46 = vmul.f32 %v256_v41, %v21_v40 }
 0x233   :  { %v1227_v44 = vpop.f32.mrf.mxu1 }
 0x234   :  { %v267_v52 = vadd.f32 %v265_v46, %v263_v48 }
 0x235   :  { %v259_v47 = vpop.f32.mrf.mxu1 }
 0x236   :  { %v266_v50 = vmul.f32 %v259_v47, %v22_v45 }
 0x237   :  { %v1228_v51 = vpop.f32.mrf.mxu1 }
 0x238   :  { %v268_v53 = vadd.f32 %v266_v50, %v264_v49 }
 0x23a   :  { %v1567_v54 = vpack.c.bf16 %v268_v53, %v267_v52 }
 0x23c   :  { %374 = vrot.lane.b32.xlu0 %v1567_v54, %s1428_s29  ;;  %271 = vrot.lane.b32.xlu1 %v1567_v54, %s1429_s30 }
 0x240   :  { %323 = vrot.lane.b32.xlu1 %v1567_v54, %s1430_s4 }
 0x244   :  { %321 = vrot.lane.b32.xlu1 %v1567_v54, %s1431_s5  ;;  %s1439_s5 = smov 8  }
 0x248   :  { %425 = vrot.lane.b32.xlu1 %v1567_v54, %s1432_s6  ;;  %s1440_s6 = smov 16  }
 0x24c   :  { %372 = vrot.lane.b32.xlu1 %v1567_v54, %s1433_s7  ;;  %s1441_s7 = smov 24  }
 0x250   :  { %423 = vrot.lane.b32.xlu1 %v1567_v54, %s1434_s8 }
 0x2ae   :  { %v272_v55 = vpop.permute.xlu1 %271  ;;  %v375_v59 = vpop.permute.xlu0 %374 }
 0x2af   :  { %v278_v56 = vsel %vm273_vm1, %v272_v55, 0  ;;  %v380_v61 = vsel %vm273_vm1, %v375_v59, 0 }
 0x2b0   :  { %1230 = vmatpush3.bf16.xpose.msra.mxu0 %v278_v56 }
 0x2b1   :  { %1241 = vmatprep.subr.bf16.mxu0 %v1426_v2 }
 0x2b2   :  { %v324_v57 = vpop.permute.xlu1 %323 }
 0x2b3   :  { %v329_v58 = vsel %vm273_vm1, %v324_v57, 0 }
 0x2b4   :  { %1236 = vmatpush3.bf16.xpose.msra.mxu1 %v329_v58 }
 0x2b5   :  { %1247 = vmatprep.subr.bf16.mxu1 %v1426_v2 }
 0x2b6   :  { %v322_v60 = vpop.permute.xlu1 %321 }
 0x2b7   :  { %1232 = vmatmul.mubr.msk.bf16.vlgmr.msra.gmra.mxu0 %vm273_vm1, %v1567_v54 }
 0x2b8   :  { %1242 = vmatpush3.bf16.xpose.msra.mxu0 %v380_v61  ;;  %1243 = vmatprep.mubr.msk.bf16.mxu0 %vm1427_vm0, %v1426_v2 }
 0x2b9   :  { %1253 = vmatprep.subr.bf16.mxu0 %v1426_v2 }
 0x2ba   :  { %v426_v62 = vpop.permute.xlu1 %425 }
 0x2bb   :  { %v431_v63 = vsel %vm273_vm1, %v426_v62, 0  ;;  %1238 = vmatmul.mubr.msk.bf16.vlgmr.msra.gmra.mxu1 %vm273_vm1, %v322_v60 }
 0x2bc   :  { %1248 = vmatpush3.bf16.xpose.msra.mxu1 %v431_v63  ;;  %1249 = vmatprep.mubr.msk.bf16.mxu1 %vm1427_vm0, %v1426_v2 }
 0x2bd   :  { %1259 = vmatprep.subr.bf16.mxu1 %v1426_v2 }
 0x2be   :  { %v373_v3 = vpop.permute.xlu1 %372 }
 0x2bf   :  { %1244 = vmatmul.mubr.msk.bf16.vlgmr.msra.gmra.mxu0 %vm273_vm1, %v373_v3 }
 0x2c0   :  { %1255 = vmatprep.mubr.msk.bf16.mxu0 %vm1427_vm0, %v1426_v2 }
 0x2c2   :  { %v424_v4 = vpop.permute.xlu1 %423 }
 0x2c3   :  { %1250 = vmatmul.mubr.msk.bf16.vlgmr.msra.gmra.mxu1 %vm273_vm1, %v424_v4 }
 0x2c4   :  { %1261 = vmatprep.mubr.msk.bf16.mxu1 %vm1427_vm0, %v1426_v2 }
 0x377   :  { %v314_v6 = vpop.f32.mrf.mxu0 }
 0x378   :  { %v474_v7 = vadd.f32 %v314_v6, %v23_v5 }
 0x379   :  { %v1233_v8 = vpop.f32.mrf.mxu0 }
 0x37a   :  { %v483_v11 = vsel %vm482_vm2, %v474_v7, -inf }
 0x37b   :  { %v365_v12 = vpop.f32.mrf.mxu1  ;;  %484 = vmax.xlane.f32.xlu1 %v483_v11  ;;  %v317_v13 = vpop.f32.mrf.mxu0 }
 0x37c   :  { %v476_v14 = vadd.f32 %v365_v12, %v25_v9  ;;  %v475_v15 = vadd.f32 %v317_v13, %v24_v10 }
 0x37d   :  { %v1234_v16 = vpop.f32.mrf.mxu0  ;;  %v1239_v17 = vpop.f32.mrf.mxu1 }
 0x37e   :  { %v489_v20 = vsel %vm482_vm2, %v476_v14, -inf  ;;  %v486_v21 = vsel %vm482_vm2, %v475_v15, -inf }
 0x37f   :  { %v368_v22 = vpop.f32.mrf.mxu1  ;;  %490 = vmax.xlane.f32.xlu1 %v489_v20  ;;  %487 = vmax.xlane.f32.xlu0 %v486_v21  ;;  %v416_v23 = vpop.f32.mrf.mxu0 }
 0x380   :  { %v477_v24 = vadd.f32 %v368_v22, %v26_v18  ;;  %v478_v25 = vadd.f32 %v416_v23, %v27_v19 }
 0x381   :  { %v1240_v26 = vpop.f32.mrf.mxu1  ;;  %v1245_v27 = vpop.f32.mrf.mxu0 }
 0x382   :  { %v492_v30 = vsel %vm482_vm2, %v477_v24, -inf  ;;  %v495_v31 = vsel %vm482_vm2, %v478_v25, -inf }
 0x383   :  { %v467_v32 = vpop.f32.mrf.mxu1  ;;  %493 = vmax.xlane.f32.xlu0 %v492_v30  ;;  %496 = vmax.xlane.f32.xlu1 %v495_v31  ;;  %v419_v33 = vpop.f32.mrf.mxu0 }
 0x384   :  { %v480_v34 = vadd.f32 %v467_v32, %v29_v28  ;;  %v479_v35 = vadd.f32 %v419_v33, %v28_v29 }
 0x385   :  { %v1246_v36 = vpop.f32.mrf.mxu0  ;;  %v1251_v37 = vpop.f32.mrf.mxu1 }
 0x386   :  { %v501_v39 = vsel %vm482_vm2, %v480_v34, -inf  ;;  %v498_v40 = vsel %vm482_vm2, %v479_v35, -inf }
 0x387   :  { %v470_v41 = vpop.f32.mrf.mxu1  ;;  %502 = vmax.xlane.f32.xlu1 %v501_v39  ;;  %499 = vmax.xlane.f32.xlu0 %v498_v40 }
 0x388   :  { %v481_v42 = vadd.f32 %v470_v41, %v30_v38 }
 0x389   :  { %v1252_v43 = vpop.f32.mrf.mxu1 }
 0x38a   :  { %v504_v44 = vsel %vm482_vm2, %v481_v42, -inf }
 0x38b   :  { %505 = vmax.xlane.f32.xlu0 %v504_v44 }
 0x398   :  { %575 = vrot.lane.b32.xlu1 %v1567_v54, %s1435_s24 }
 0x404   :  { %v485_v45 = vpop.xlane.xlu1 %484 }
 0x405   :  { %v507_v46 = vsub.f32 %v474_v7, %v485_v45 }
 0x407   :  { %v515_v47 = vmul.f32 1.442695, %v507_v46 }
 0x408   :  { %v491_v48 = vpop.xlane.xlu1 %490  ;;  %v488_v49 = vpop.xlane.xlu0 %487 }
 0x409   :  { %1382 = vpow2.f32 %v515_v47  ;;  %v509_v50 = vsub.f32 %v476_v14, %v491_v48  ;;  %v508_v51 = vsub.f32 %v475_v15, %v488_v49 }
 0x40b   :  { %v519_v52 = vmul.f32 1.442695, %v509_v50  ;;  %v517_v53 = vmul.f32 1.442695, %v508_v51 }
 0x40c   :  { %v494_v55 = vpop.xlane.xlu0 %493  ;;  %v497_v56 = vpop.xlane.xlu1 %496 }
 0x40d   :  { %1384 = vpow2.f32 %v519_v52  ;;  %v510_v57 = vsub.f32 %v477_v24, %v494_v55  ;;  %v511_v58 = vsub.f32 %v478_v25, %v497_v56 }
 0x40e   :  { %1386 = vpow2.f32 %v517_v53 }
 0x40f   :  { %v521_v59 = vmul.f32 1.442695, %v510_v57  ;;  %v523_v60 = vmul.f32 1.442695, %v511_v58 }
 0x410   :  { %v503_v61 = vpop.xlane.xlu1 %502  ;;  %v500_v62 = vpop.xlane.xlu0 %499 }
 0x411   :  { %1388 = vpow2.f32 %v521_v59  ;;  %v513_v63 = vsub.f32 %v480_v34, %v503_v61  ;;  %v512_v3 = vsub.f32 %v479_v35, %v500_v62 }
 0x412   :  { %1390 = vpow2.f32 %v523_v60  ;;  %v1364_v60 = vld [vmem:[%s1744_s2 + $0x88] sm:$0xff]  }
 0x413   :  { %v527_v4 = vmul.f32 1.442695, %v513_v63  ;;  %v525_v5 = vmul.f32 1.442695, %v512_v3  ;;  %v1365_v3 = vld [vmem:[%s1744_s2 + $0x80] sm:$0xff]  }
 0x414   :  { %v576_v6 = vpop.permute.xlu1 %575  ;;  %v506_v7 = vpop.xlane.xlu0 %505 }
 0x415   :  { %1392 = vpow2.f32 %v527_v4  ;;  %v514_v8 = vsub.f32 %v481_v42, %v506_v7  ;;  %1254 = vmatpush3.bf16.msra.mxu0 %v576_v6 }
 0x416   :  { %v1383_v9 = vpop.eup %1382  ;;  %1394 = vpow2.f32 %v525_v5  ;;  %1265 = vmatprep.subr.bf16.mxu0 %v1426_v2 }
 0x417   :  { %v529_v10 = vmul.f32 1.442695, %v514_v8  ;;  %v531_v11 = vsel %vm482_vm2, %v1383_v9, 0.0 }
 0x418   :  { %532 = vadd.xlane.f32.xlu1 %v531_v11 }
 0x419   :  { %1396 = vpow2.f32 %v529_v10 }
 0x41a   :  { %v1385_v12 = vpop.eup %1384 }
 0x41b   :  { %v1387_v13 = vpop.eup %1386  ;;  %v537_v14 = vsel %vm482_vm2, %v1385_v12, 0.0 }
 0x41c   :  { %538 = vadd.xlane.f32.xlu1 %v537_v14  ;;  %v534_v15 = vsel %vm482_vm2, %v1387_v13, 0.0 }
 0x41d   :  { %535 = vadd.xlane.f32.xlu0 %v534_v15 }
 0x41e   :  { %v1389_v16 = vpop.eup %1388 }
 0x41f   :  { %v1391_v17 = vpop.eup %1390  ;;  %v540_v18 = vsel %vm482_vm2, %v1389_v16, 0.0 }
 0x420   :  { %v543_v19 = vsel %vm482_vm2, %v1391_v17, 0.0 }
 0x421   :  { %544 = vadd.xlane.f32.xlu1 %v543_v19  ;;  %541 = vadd.xlane.f32.xlu0 %v540_v18 }
 0x422   :  { %v1393_v20 = vpop.eup %1392 }
 0x423   :  { %v1395_v21 = vpop.eup %1394  ;;  %v549_v22 = vsel %vm482_vm2, %v1393_v20, 0.0 }
 0x424   :  { %v546_v23 = vsel %vm482_vm2, %v1395_v21, 0.0 }
 0x425   :  { %550 = vadd.xlane.f32.xlu1 %v549_v22  ;;  %547 = vadd.xlane.f32.xlu0 %v546_v23 }
 0x426   :  { %v1397_v24 = vpop.eup %1396 }
 0x427   :  { %v552_v25 = vsel %vm482_vm2, %v1397_v24, 0.0 }
 0x429   :  { %553 = vadd.xlane.f32.xlu0 %v552_v25 }
 0x436   :  { %669 = vrot.lane.b32.xlu1 %v1567_v54, %s1436_s25 }
 0x43a   :  { %716 = vrot.lane.b32.xlu1 %v1567_v54, %s1437_s26 }
 0x43f   :  { %622 = vrot.lane.b32.xlu0 %v1567_v54, %s1438_s27 }
 0x4a1   :  { %v533_v26 = vpop.xlane.xlu1 %532 }
 0x4a2   :  { %1398 = vrcp.f32 %v533_v26 }
 0x4a5   :  { %v539_v27 = vpop.xlane.xlu1 %538 }
 0x4a6   :  { %v536_v28 = vpop.xlane.xlu0 %535 }
 0x4a7   :  { %1400 = vrcp.f32 %v536_v28 }
 0x4a8   :  { %1402 = vrcp.f32 %v539_v27 }
 0x4aa   :  { %v545_v29 = vpop.xlane.xlu1 %544  ;;  %v542_v30 = vpop.xlane.xlu0 %541 }
 0x4ab   :  { %1404 = vrcp.f32 %v542_v30 }
 0x4ac   :  { %1406 = vrcp.f32 %v545_v29 }
 0x4ae   :  { %v551_v31 = vpop.xlane.xlu1 %550  ;;  %v548_v32 = vpop.xlane.xlu0 %547 }
 0x4af   :  { %1408 = vrcp.f32 %v548_v32  ;;  %v1399_v33 = vpop.eup %1398 }
 0x4b0   :  { %1410 = vrcp.f32 %v551_v31  ;;  %v563_v36 = vmul.f32 %v1399_v33, %v1383_v9  ;;  %v1366_v33 = vld [vmem:[%s1744_s2 + $0xc8] sm:$0xff]  }
 0x4b2   :  { %v554_v34 = vpop.xlane.xlu0 %553  ;;  %v670_v40 = vpop.permute.xlu1 %669 }
 0x4b3   :  { %1412 = vrcp.f32 %v554_v34 }
 0x4b4   :  { %v1401_v35 = vpop.eup %1400 }
 0x4b5   :  { %v564_v54 = vmul.f32 %v1401_v35, %v1387_v13  ;;  %v1403_v38 = vpop.eup %1402 }
 0x4b6   :  { %v623_v37 = vpop.permute.xlu0 %622  ;;  %v565_v42 = vmul.f32 %v1403_v38, %v1385_v12  ;;  %v717_v48 = vpop.permute.xlu1 %716 }
 0x4b7   :  { %1260 = vmatpush3.bf16.msra.mxu1 %v623_v37  ;;  %v571_v39 = vpack.c.bf16 %v564_v54, %v563_v36 }
 0x4b8   :  { %1271 = vmatprep.subr.bf16.mxu1 %v1426_v2  ;;  %v1405_v41 = vpop.eup %1404 }
 0x4b9   :  { %1256 = vmatmul.mubr.msk.bf16.vlgmr.msra.gmra.mxu0 %vm482_vm2, %v571_v39  ;;  %v566_v43 = vmul.f32 %v1405_v41, %v1389_v16  ;;  %v1407_v44 = vpop.eup %1406  ;;  %v1367_v41 = vld [vmem:[%s1744_s2 + $0xc0] sm:$0xff]  }
 0x4ba   :  { %1266 = vmatpush3.bf16.msra.mxu0 %v670_v40  ;;  %1267 = vmatprep.mubr.msk.bf16.mxu0 %vm1427_vm0, %v1426_v2  ;;  %v567_v49 = vmul.f32 %v1407_v44, %v1391_v17  ;;  %v1372_v44 = vld [vmem:[%s1744_s2 + $0x98] sm:$0xff]  }
 0x4bb   :  { %1277 = vmatprep.subr.bf16.mxu0 %v1426_v2  ;;  %v572_v45 = vpack.c.bf16 %v566_v43, %v565_v42  ;;  %v1370_v42 = vld [vmem:[%s1744_s2 + $0xa8] sm:$0xff]   ;;  %v1371_v43 = vld [vmem:[%s1744_s2 + $0xa0] sm:$0xff]  }
 0x4bc   :  { %v1409_v46 = vpop.eup %1408 }
 0x4bd   :  { %v1411_v47 = vpop.eup %1410  ;;  %1262 = vmatmul.mubr.msk.bf16.vlgmr.msra.gmra.mxu1 %vm482_vm2, %v572_v45  ;;  %v568_v50 = vmul.f32 %v1409_v46, %v1395_v21  ;;  %v1373_v45 = vld [vmem:[%s1744_s2 + $0x90] sm:$0xff]  }
 0x4be   :  { %1272 = vmatpush3.bf16.msra.mxu1 %v717_v48  ;;  %1273 = vmatprep.mubr.msk.bf16.mxu1 %vm1427_vm0, %v1426_v2  ;;  %v569_v53 = vmul.f32 %v1411_v47, %v1393_v20 }
 0x4bf   :  { %v573_v52 = vpack.c.bf16 %v568_v50, %v567_v49  ;;  %1285 = vmatprep.subr.bf16.mxu1 %v1426_v2 }
 0x4c0   :  { %v1413_v51 = vpop.eup %1412 }
 0x4c1   :  { %v570_v55 = vmul.f32 %v1413_v51, %v1397_v24  ;;  %1268 = vmatmul.mubr.msk.bf16.vlgmr.msra.gmra.mxu0 %vm482_vm2, %v573_v52 }
 0x4c2   :  { %1281 = vmatprep.mubr.msk.bf16.mxu0 %vm1427_vm0, %v1426_v2  ;;  %1278 = vmatpush3.bf16.msra.mxu0 %v1364_v60 }
 0x4c3   :  { %v574_v56 = vpack.c.bf16 %v570_v55, %v569_v53  ;;  %1279 = vmatprep.subr.bf16.mxu0 %v1426_v2 }
 0x4c5   :  { %1274 = vmatmul.mubr.msk.bf16.vlgmr.msra.gmra.mxu1 %vm482_vm2, %v574_v56  ;;  %v1122_v56 = vld [vmem:[%s1745_s1 + $0x1] ss:$0 sm:$0xff] }
 0x4c6   :  { %1301 = vmatprep.mubr.msk.bf16.mxu1 %vm1427_vm0, %v1426_v2  ;;  %1280 = vmatpush3.bf16.msra.mxu0 %v1365_v3  ;;  %v1377_v3 = vld [vmem:[%s1744_s2 + $0xd0] sm:$0xff]  }
 0x4c7   :  { %1305 = vmatprep.subr.bf16.mxu0 %v1426_v2  ;;  %1286 = vmatpush3.bf16.msra.mxu1 %v1366_v33 }
 0x4c8   :  { %1287 = vmatprep.subr.bf16.mxu1 %v1426_v2 }
 0x4cb   :  { %1288 = vmatpush3.bf16.msra.mxu1 %v1367_v41 }
 0x4cc   :  { %1289 = vmatprep.subr.bf16.mxu1 %v1426_v2 }
 0x579   :  { %v615_v57 = vpop.f32.mrf.mxu0 }
 0x57b   :  { %v1257_v58 = vpop.f32.mrf.mxu0 }
 0x57d   :  { %v618_v59 = vpop.f32.mrf.mxu0  ;;  %v662_v61 = vpop.f32.mrf.mxu1 }
 0x57f   :  { %v1258_v62 = vpop.f32.mrf.mxu0  ;;  %v1263_v63 = vpop.f32.mrf.mxu1 }
 0x580   :  { %v1375_v62 = vld [vmem:[%s1744_s2 + $0xe0] sm:$0xff]   ;;  %v1376_v63 = vld [vmem:[%s1744_s2 + $0xd8] sm:$0xff]  }
 0x581   :  { %v665_v4 = vpop.f32.mrf.mxu1  ;;  %v709_v5 = vpop.f32.mrf.mxu0 }
 0x582   :  { %v1333_v6 = vpack.i.bf16 %v665_v4, %v662_v61  ;;  %v1374_v61 = vld [vmem:[%s1744_s2 + $0xe8] sm:$0xff]  }
 0x583   :  { %v1264_v7 = vpop.f32.mrf.mxu1  ;;  %v1269_v8 = vpop.f32.mrf.mxu0 }
 0x584   :  { %1334 = vrot.lane.b32.xlu0 %v1333_v6, %s1439_s5 }
 0x585   :  { %v712_v9 = vpop.f32.mrf.mxu0  ;;  %v756_v10 = vpop.f32.mrf.mxu1 }
 0x586   :  { %v1338_v11 = vpack.i.bf16 %v712_v9, %v709_v5 }
 0x587   :  { %v1270_v12 = vpop.f32.mrf.mxu0  ;;  %v1275_v13 = vpop.f32.mrf.mxu1 }
 0x588   :  { %1339 = vrot.lane.b32.xlu1 %v1338_v11, %s1440_s6 }
 0x589   :  { %v759_v14 = vpop.f32.mrf.mxu1 }
 0x58a   :  { %v1343_v15 = vpack.i.bf16 %v759_v14, %v756_v10 }
 0x58b   :  { %v1276_v16 = vpop.f32.mrf.mxu1 }
 0x58c   :  { %1344 = vrot.lane.b32.xlu0 %v1343_v15, %s1441_s7 }
 0x5f6   :  { %v1335_v17 = vpop.permute.xlu0 %1334 }
 0x5f7   :  { %v1337_v19 = vunpack.i.h.bf16 %v1335_v17  ;;  %v1336_v20 = vunpack.i.l.bf16 %v1335_v17 }
 0x5f9   :  { %v787_v24 = vsel %vm273_vm1, %v615_v57, %v1336_v20  ;;  %v788_v25 = vsel %vm273_vm1, %v618_v59, %v1337_v19 }
 0x5fa   :  { %v1340_v18 = vpop.permute.xlu1 %1339 }
 0x5fb   :  { %v1342_v21 = vunpack.i.h.bf16 %v1340_v18  ;;  %v1341_v22 = vunpack.i.l.bf16 %v1340_v18 }
 0x5fd   :  { %v790_v28 = vsel %vm482_vm2, %v788_v25, %v1342_v21  ;;  %v789_v29 = vsel %vm482_vm2, %v787_v24, %v1341_v22 }
 0x5fe   :  { %v1345_v23 = vpop.permute.xlu0 %1344 }
 0x5ff   :  { %v1347_v26 = vunpack.i.h.bf16 %v1345_v23  ;;  %v1346_v27 = vunpack.i.l.bf16 %v1345_v23 }
 0x601   :  { %v792_v30 = vsel %vm791_vm3, %v789_v29, %v1346_v27  ;;  %v793_v31 = vsel %vm791_vm3, %v790_v28, %v1347_v26 }
 0x602   :  { %v794_v32 = vpack.c.bf16 %v793_v31, %v792_v30 }
 0x604   :  { %1282 = vmatmul.mubr.msk.bf16.vlgmr.msra.gmra.mxu0 %vm811_vm4, %v794_v32 }
 0x605   :  { %1313 = vmatprep.mubr.msk.bf16.mxu0 %vm1427_vm0, %v1426_v2  ;;  %1306 = vmatpush3.bf16.msra.mxu0 %v1374_v61 }
 0x606   :  { %1307 = vmatprep.subr.bf16.mxu0 %v1426_v2 }
 0x609   :  { %1308 = vmatpush3.bf16.msra.mxu0 %v1375_v62 }
 0x60a   :  { %1309 = vmatprep.subr.bf16.mxu0 %v1426_v2 }
 0x60d   :  { %1310 = vmatpush3.bf16.msra.mxu0 %v1376_v63 }
 0x60e   :  { %1311 = vmatprep.subr.bf16.mxu0 %v1426_v2 }
 0x611   :  { %1312 = vmatpush3.bf16.msra.mxu0 %v1377_v3 }
 0x6c4   :  { %v849_v34 = vpop.f32.mrf.mxu0 }
 0x6c5   :  { %v1677_v35 = vadd.f32 %v849_v34, %v1465_v0  ;;  %v1368_v0 = vld [vmem:[%s1744_s2 + $0xb8] sm:$0xff]  }
 0x6c6   :  { %v1283_v36 = vpop.f32.mrf.mxu0  ;;  %1290 = vmatpush3.bf16.msra.mxu1 %v1368_v0 }
 0x6c7   :  { %v858_v54 = vmul.f32 %v1677_v35, %v1677_v35  ;;  %1291 = vmatprep.subr.bf16.mxu1 %v1426_v2 }
 0x6c8   :  { %v852_v37 = vpop.f32.mrf.mxu0 }
 0x6c9   :  { %v1682_v38 = vadd.f32 %v852_v37, %v1470_v1  ;;  %860 = vadd.xlane.f32.xlu1 %v858_v54  ;;  %v1369_v1 = vld [vmem:[%s1744_s2 + $0xb0] sm:$0xff]  }
 0x6ca   :  { %v1284_v39 = vpop.f32.mrf.mxu0  ;;  %1292 = vmatpush3.bf16.msra.mxu1 %v1369_v1 }
 0x6cb   :  { %v859_v40 = vmul.f32 %v1682_v38, %v1682_v38  ;;  %1293 = vmatprep.subr.bf16.mxu1 %v1426_v2 }
 0x6cd   :  { %862 = vadd.xlane.f32.xlu0 %v859_v40 }
 0x6ce   :  { %1294 = vmatpush3.bf16.msra.mxu1 %v1370_v42 }
 0x6cf   :  { %1295 = vmatprep.subr.bf16.mxu1 %v1426_v2 }
 0x6d2   :  { %1296 = vmatpush3.bf16.msra.mxu1 %v1371_v43 }
 0x6d3   :  { %1297 = vmatprep.subr.bf16.mxu1 %v1426_v2 }
 0x6d6   :  { %1298 = vmatpush3.bf16.msra.mxu1 %v1372_v44 }
 0x6d7   :  { %1299 = vmatprep.subr.bf16.mxu1 %v1426_v2 }
 0x6da   :  { %1300 = vmatpush3.bf16.msra.mxu1 %v1373_v45 }
 0x752   :  { %v861_v46 = vpop.xlane.xlu1 %860 }
 0x753   :  { %v864_v47 = vmul.f32 0.03125, %v861_v46 }
 0x755   :  { %v866_v48 = vadd.f32 1e-05, %v864_v47 }
 0x756   :  { %v863_v49 = vpop.xlane.xlu0 %862 }
 0x757   :  { %1414 = vrsqrt.f32 %v866_v48  ;;  %v865_v50 = vmul.f32 0.03125, %v863_v49 }
 0x759   :  { %v867_v51 = vadd.f32 1e-05, %v865_v50 }
 0x75b   :  { %1416 = vrsqrt.f32 %v867_v51 }
 0x764   :  { %v1415_v52 = vpop.eup %1414 }
 0x765   :  { %v870_v53 = vmul.f32 %v1415_v52, %v1677_v35 }
 0x767   :  { %v876_v58 = vmul.f32 %v1122_v56, %v870_v53 }
 0x768   :  { %v1417_v55 = vpop.eup %1416 }
 0x769   :  { %v871_v57 = vmul.f32 %v1417_v55, %v1682_v38 }
 0x76b   :  { %v877_v59 = vmul.f32 %v1122_v56, %v871_v57 }
 0x76d   :  { %v878_v60 = vpack.c.bf16 %v877_v59, %v876_v58 }
 0x76f   :  { %1302 = vmatmul.mubr.bf16.vlgmr.msra.gmra.mxu1 %v878_v60 }
 0x82f   :  { %v977_v4 = vpop.f32.mrf.mxu1 }
 0x830   :  { %1000 = vrot.lane.b32.xlu0 %v977_v4, %s1435_s24  ;;  %v1131_v8 = vmul.f32 -1.442695, %v977_v4 }
 0x831   :  { %v1303_v5 = vpop.f32.mrf.mxu1 }
 0x832   :  { %1418 = vpow2.f32 %v1131_v8 }
 0x833   :  { %v980_v6 = vpop.f32.mrf.mxu1 }
 0x834   :  { %1002 = vrot.lane.b32.xlu1 %v980_v6, %s1435_s24  ;;  %v1132_v9 = vmul.f32 -1.442695, %v980_v6 }
 0x835   :  { %v1304_v7 = vpop.f32.mrf.mxu1 }
 0x836   :  { %1420 = vpow2.f32 %v1132_v9 }
 0x83f   :  { %v1419_v10 = vpop.eup %1418 }
 0x840   :  { %v990_v2 = vadd.f32 1.0, %v1419_v10 }
 0x842   :  { %1422 = vrcp.f32 %v990_v2 }
 0x843   :  { %v1421_v11 = vpop.eup %1420 }
 0x844   :  { %v991_v12 = vadd.f32 1.0, %v1421_v11 }
 0x846   :  { %1424 = vrcp.f32 %v991_v12 }
 0x84f   :  { %v1423_v13 = vpop.eup %1422 }
 0x850   :  { %v996_v16 = vmul.f32 %v1423_v13, %v977_v4 }
 0x853   :  { %v1425_v14 = vpop.eup %1424 }
 0x854   :  { %v997_v17 = vmul.f32 %v1425_v14, %v980_v6 }
 0x8a2   :  { %v1001_v15 = vpop.permute.xlu0 %1000 }
 0x8a3   :  { %v1006_v19 = vmul.f32 %v1001_v15, %v996_v16 }
 0x8a6   :  { %v1003_v18 = vpop.permute.xlu1 %1002 }
 0x8a7   :  { %v1007_v20 = vmul.f32 %v1003_v18, %v997_v17 }
 0x8a9   :  { %v1008_v21 = vpack.c.bf16 %v1007_v20, %v1006_v19 }
 0x8ab   :  { %1314 = vmatmul.mubr.msk.bf16.vlgmr.msra.gmra.mxu0 %vm1041_vm5, %v1008_v21 }
 0x96b   :  { %v1079_v22 = vpop.f32.mrf.mxu0 }
 0x96c   :  { %v1086_v23 = vadd.f32 %v1079_v22, %v1677_v35 }
 0x96d   :  { %v1315_v24 = vpop.f32.mrf.mxu0 }
 0x96e   :  { %1088 = vst [vmem:[%s1746_s3] sm:$0xff] %v1086_v23 }
 0x96f   :  { %v1082_v25 = vpop.f32.mrf.mxu0 }
 0x970   :  { %v1087_v26 = vadd.f32 %v1082_v25, %v1682_v38 }
 0x971   :  { %v1316_v27 = vpop.f32.mrf.mxu0 }
 0x972   :  { %1089 = vst [vmem:[%s1746_s3 + $0x8] sm:$0xff] %v1087_v26 }

</bundles_post_ra>
